<compile_context>
chip_gen: v6e
topology: v6e:2x2x1
jax: 0.10.0
libtpu: 0.0.40
codegen_flags: <defaults>
</compile_context>

<pallas_src>
import functools

import jax
import jax.numpy as jnp
from jax.experimental import pallas as pl
from jax.experimental.pallas import tpu as pltpu

_LANE = 128


def _loss_sums_kernel(x_ref, t_ref, acc_ref, *, C, HW, ts, tiles_per_split,
                      needs_mask):
    """Accumulates into acc_ref (3C+1, 8, 128) per (n, split) parallel index:
      rows [0,  C)  : sum over pixels of softmax(x)            per channel
      rows [C, 2C)  : sum over pixels of softmax(x)*onehot(t)  per channel
      rows [2C,3C)  : count of target == c                     per channel
      row   3C      : sum over pixels of cross-entropy (-log softmax[target])
    Padded / ragged / redundant pixels are masked via a global pixel iota.
    """
    p = pl.program_id(1)
    j = pl.program_id(2)

    @pl.when(j == 0)
    def _():
        acc_ref[...] = jnp.zeros_like(acc_ref)

    t = t_ref[...]                                   # (ts, 128) int32

    if needs_mask:
        # Unclamped linear tile index (the index_map clamps redundant tiles to
        # the last valid block; here they mask to an all-zero contribution).
        lin = p * tiles_per_split + j
        row = jax.lax.broadcasted_iota(jnp.int32, (ts, _LANE), 0)
        if HW % _LANE == 0:
            valid = (lin * ts + row) < (HW // _LANE)
        else:
            col = jax.lax.broadcasted_iota(jnp.int32, (ts, _LANE), 1)
            valid = (lin * ts + row) * _LANE + col < HW
        maskf = valid.astype(jnp.float32)
        # Sanitize: ragged-tile VMEM garbage must not poison exp/log (NaN*0=NaN).
        t = jnp.where(valid, t, -1)
        xs = [jnp.where(valid, x_ref[c].astype(jnp.float32), 0.0)
              for c in range(C)]
    else:
        maskf = None
        xs = [x_ref[c].astype(jnp.float32) for c in range(C)]

    # Numerically-stable softmax / log-sum-exp over channels (unrolled; C small).
    # TODO(synk): switch to a two-pass lax.fori_loop over channels for C >~ 16
    # to bound code size / vreg pressure.
    m = xs[0]
    for c in range(1, C):
        m = jnp.maximum(m, xs[c])
    es = [jnp.exp(xc - m) for xc in xs]              # EUP
    s = es[0]
    for c in range(1, C):
        s = s + es[c]
    inv_s = pl.reciprocal(s, approx=False)           # exact, for PyTorch parity
    lse = m + jnp.log(s)                             # (ts, 128)

    w = inv_s if maskf is None else inv_s * maskf    # shared softmax*mask factor

    def part(v):
        # (ts, 128) -> (8, 128): reduce only across vreg rows (pure VPU adds,
        # no XLU sublane reduce, no per-step concat). 8->1 / 128->1 in wrapper.
        return v.reshape(ts // 8, 8, _LANE).sum(axis=0)

    x_at_t = jnp.zeros_like(m)
    for c in range(C):
        is_c = t == c
        oh = is_c.astype(jnp.float32)                # 0 on masked pixels
        es_w = es[c] * w                             # (masked) softmax channel c
        acc_ref[c] += part(es_w)                     # sum softmax
        acc_ref[C + c] += part(es_w * oh)            # sum softmax * onehot
        acc_ref[2 * C + c] += part(oh)               # onehot counts
        x_at_t = jnp.where(is_c, xs[c], x_at_t)      # logit of target class

    ce = lse - x_at_t
    if maskf is not None:
        ce = ce * maskf
    acc_ref[3 * C] += part(ce)


@functools.partial(jax.jit, static_argnames=("weight_dice", "weight_ce"))
def combined_loss(inputx, target, *, weight_dice, weight_ce):
    """JAX/Pallas equivalent of CombinedLoss.forward.

    inputx: (N, C, H, W) float logits (f32 or bf16; upcast happens in-kernel)
    target: (N, H, W)    integer class indices
    returns: (total_loss, dice_val, ce_val) scalars (float32)
    """
    N, C, H, W = inputx.shape
    HW = H * W
    P = N * HW

    # free metadata reshapes -- no HBM transpose
    x = inputx.reshape(N, C, HW)
    t = target.reshape(N, HW).astype(jnp.int32)

    # ---- generation- and dtype-aware tile sizing ----
    itemsize = jnp.dtype(inputx.dtype).itemsize
    try:
        vmem_cap = int(pltpu.get_tpu_info().vmem_capacity_bytes)
    except Exception:  # pragma: no cover - conservative fallback
        vmem_cap = 64 * 1024 * 1024
    if vmem_cap <= 64 * 1024 * 1024:            # v7x-class (64 MiB VMEM / core)
        step_budget = 4 * 1024 * 1024
        vmem_limit = 48 * 1024 * 1024
    else:                                        # v5e / v6e (128 MiB VMEM)
        step_budget = 8 * 1024 * 1024
        vmem_limit = 64 * 1024 * 1024

    mult = 8 * max(1, 4 // itemsize)             # 8 (f32), 16 (bf16), 32 (int8)
    per_block_bytes = _LANE * (C * itemsize + 4)          # logits + int32 targets
    scratch_per_block = (2 * C + 10) * _LANE * 4          # f32 temporaries estimate
    ts_cap = min(4096,
                 step_budget // per_block_bytes,
                 (vmem_limit // 2) // scratch_per_block)
    ts_cap = max(mult, (ts_cap // mult) * mult)

    # pixel axis viewed as (blocks, 128); blocks >= 8 so the in-kernel
    # (ts,128)->(ts//8,8,128) reduction is well formed.
    blocks = max(8, pl.cdiv(HW, _LANE))
    ts = min(ts_cap, (blocks // 8) * 8)          # always a multiple of 8
    total_tiles = pl.cdiv(blocks, ts)            # last tile may be ragged

    # pad only up to blocks*128 (no-op for 128-divisible, non-tiny images) —
    # NO padding to a multiple of ts*128, so no extra HBM pass over the logits.
    HWp = blocks * _LANE
    if HWp != HW:
        x = jnp.pad(x, ((0, 0), (0, 0), (0, HWp - HW)))
        t = jnp.pad(t, ((0, 0), (0, HWp - HW)), constant_values=-1)
    x = x.reshape(N, C, blocks, _LANE)
    t = t.reshape(N, blocks, _LANE)

    # Second "parallel" axis keeps both v7x TensorCores busy when N == 1.
    splits = 2 if (N == 1 and total_tiles >= 2) else 1
    tiles_per_split = pl.cdiv(total_tiles, splits)
    needs_mask = (splits * tiles_per_split * ts * _LANE) != HW
    last_block = total_tiles - 1

    def x_map(n, p, j):
        return (n, 0, jnp.minimum(p * tiles_per_split + j, last_block), 0)

    def t_map(n, p, j):
        return (n, jnp.minimum(p * tiles_per_split + j, last_block), 0)

    kernel = functools.partial(
        _loss_sums_kernel, C=C, HW=HW, ts=ts,
        tiles_per_split=tiles_per_split, needs_mask=needs_mask)

    acc = pl.pallas_call(
        kernel,
        out_shape=jax.ShapeDtypeStruct((N, splits, 3 * C + 1, 8, _LANE),
                                       jnp.float32),
        grid_spec=pltpu.PrefetchScalarGridSpec(
            num_scalar_prefetch=0,
            grid=(N, splits, tiles_per_split),
            in_specs=[
                pl.BlockSpec((None, C, ts, _LANE), x_map),
                pl.BlockSpec((None, ts, _LANE), t_map),
            ],
            # one private accumulator block per parallel (n, split) index —
            # no cross-core write race; summed in the wrapper.
            out_specs=pl.BlockSpec((None, None, 3 * C + 1, 8, _LANE),
                                   lambda n, p, j: (n, p, 0, 0, 0)),
        ),
        compiler_params=pltpu.CompilerParams(
            dimension_semantics=("parallel", "parallel", "arbitrary"),
            vmem_limit_bytes=vmem_limit,
        ),
    )(x, t)

    # final tiny reductions on the (N, splits, 3C+1, 8, 128) partial slab
    sums = jnp.sum(acc, axis=(0, 1, 3, 4))       # (3C+1,)
    out_sum = sums[0:C]                          # sum softmax per channel
    inter_sum = sums[C:2 * C]                    # sum softmax * onehot
    enc_sum = sums[2 * C:3 * C]                  # onehot counts
    ce_sum = sums[3 * C]                         # total CE

    # ---- DiceLoss glue (ignore_index=None, weights=None) ----
    eps = 0.001
    numerator = 2.0 * inter_sum
    denom_raw = out_sum + enc_sum
    count = jnp.sum(
        jnp.logical_and(enc_sum == 0.0, denom_raw == 0.0).astype(jnp.float32))
    loss_per_channel = 1.0 - numerator / (denom_raw + eps)
    dice_val = (jnp.sum(loss_per_channel) - count) / (jnp.float32(C) - count)

    # ---- CrossEntropy2D glue: mean over all N*H*W pixels ----
    ce_val = ce_sum / jnp.float32(P)

    total_loss = weight_dice * dice_val + weight_ce * ce_val
    return total_loss, dice_val, ce_val


def _reference_loss(inputx, target, weight_dice, weight_ce):
    """Pure-JAX reference (mirrors the PyTorch module)."""
    x = inputx.astype(jnp.float32)
    N, C, H, W = x.shape
    soft = jax.nn.softmax(x, axis=1)
    onehot = (target[:, None, :, :] == jnp.arange(C)[None, :, None, None]
              ).astype(jnp.float32)
    inter = jnp.sum(soft * onehot, axis=(0, 2, 3))
    enc = jnp.sum(onehot, axis=(0, 2, 3))
    denom = jnp.sum(soft + onehot, axis=(0, 2, 3))
    count = jnp.sum(((enc == 0.0) & (denom == 0.0)).astype(jnp.float32))
    loss_per_channel = 1.0 - 2.0 * inter / (denom + 0.001)
    dice = (jnp.sum(loss_per_channel) - count) / (jnp.float32(C) - count)
    logp = jax.nn.log_softmax(x, axis=1)
    ce = -jnp.mean(jnp.take_along_axis(logp, target[:, None, :, :], axis=1))
    total = weight_dice * dice + weight_ce * ce
    return total, dice, ce


def _check(inputx, target, wd, wc):
    got = combined_loss(inputx, target, weight_dice=wd, weight_ce=wc)
    jax.block_until_ready(got)
    want = _reference_loss(inputx, target, wd, wc)
    got_v = jnp.stack(list(got))
    want_v = jnp.stack(list(want))
    if not bool(jnp.allclose(got_v, want_v, rtol=1e-2, atol=1e-2)):
        raise AssertionError(f"mismatch: kernel={got_v} ref={want_v}")


if __name__ == "__main__":
    key = jax.random.PRNGKey(0)
    k1, k2, k3, k4 = jax.random.split(key, 4)

    # primary small case (matches the module's expected shapes)
    N, C, H, W = 2, 4, 16, 16
    inputx = jax.random.normal(k1, (N, C, H, W), dtype=jnp.float32)
    target = jax.random.randint(k2, (N, H, W), 0, C, dtype=jnp.int32)
    _check(inputx, target, 1.0, 1.0)

    # second case exercising the split "parallel" axis + ragged-tile masking
    N2, C2, H2, W2 = 1, 3, 40, 40
    inputx2 = jax.random.normal(k3, (N2, C2, H2, W2), dtype=jnp.float32)
    target2 = jax.random.randint(k4, (N2, H2, W2), 0, C2, dtype=jnp.int32)
    _check(inputx2, target2, 0.5, 2.0)

    print("KERNEL_OK")
</pallas_src>

<mosaic_0001>
module attributes {stable_mosaic.version = 11 : i64} {
  func.func @_loss_sums_kernel(%arg0: i32, %arg1: i32, %arg2: i32, %arg3: memref<1x4x8x128xf32, #tpu.memory_space<vmem>>, %arg4: memref<1x8x128xi32, #tpu.memory_space<vmem>>, %arg5: memref<1x1x13x8x128xf32, #tpu.memory_space<vmem>>) attributes {dimension_semantics = [#tpu.dimension_semantics<parallel>, #tpu.dimension_semantics<parallel>, #tpu.dimension_semantics<arbitrary>], iteration_bounds = array<i64: 2, 1, 1>, scalar_prefetch = 0 : i64, scratch_operands = 0 : i64, tpu.core_type = #tpu.core_type<tc>, window_params = [{transform_indices = @transform_0, window_bounds = array<i64: 1, 4, 8, 128>}, {transform_indices = @transform_1, window_bounds = array<i64: 1, 8, 128>}, {transform_indices = @transform_2, window_bounds = array<i64: 1, 1, 13, 8, 128>}]} {
    %c0_i32 = arith.constant 0 : i32
    %0 = arith.cmpi eq, %arg2, %c0_i32 : i32
    %1 = arith.extui %0 : i1 to i32
    %c0_i32_0 = arith.constant 0 : i32
    %2 = arith.cmpi ne, %1, %c0_i32_0 : i32
    scf.if %2 {
      %cst_157 = arith.constant 0.000000e+00 : f32
      %186 = vector.broadcast %cst_157 : f32 to vector<13x8x128xf32>
      %c0_158 = arith.constant 0 : index
      %c0_159 = arith.constant 0 : index
      %c0_160 = arith.constant 0 : index
      %c0_161 = arith.constant 0 : index
      %c0_162 = arith.constant 0 : index
      %187 = vector.load %arg5[%c0_158, %c0_159, %c0_160, %c0_161, %c0_162] : memref<1x1x13x8x128xf32, #tpu.memory_space<vmem>>, vector<1x1x13x8x128xf32>
      %188 = vector.shape_cast %187 : vector<1x1x13x8x128xf32> to vector<13x8x128xf32>
      %189 = vector.shape_cast %186 : vector<13x8x128xf32> to vector<1x1x13x8x128xf32>
      tpu.vector_store %arg5[%c0_158, %c0_159, %c0_160, %c0_161, %c0_162], %189 {strides = array<i32>} : memref<1x1x13x8x128xf32, #tpu.memory_space<vmem>>, vector<1x1x13x8x128xf32>,
    } else {
    }
    %c0 = arith.constant 0 : index
    %c0_1 = arith.constant 0 : index
    %c0_2 = arith.constant 0 : index
    %3 = vector.load %arg4[%c0, %c0_1, %c0_2] : memref<1x8x128xi32, #tpu.memory_space<vmem>>, vector<1x8x128xi32>
    %4 = vector.shape_cast %3 : vector<1x8x128xi32> to vector<8x128xi32>
    %c1_i32 = arith.constant 1 : i32
    %5 = arith.muli %arg1, %c1_i32 : i32
    %6 = arith.addi %5, %arg2 : i32
    %7 = tpu.iota {dimensions = array<i32: 0>} : vector<8x128xi32>
    %c8_i32 = arith.constant 8 : i32
    %8 = arith.muli %6, %c8_i32 : i32
    %9 = vector.broadcast %8 : i32 to vector<8x128xi32>
    %10 = arith.addi %9, %7 : vector<8x128xi32>
    %c2_i32 = arith.constant 2 : i32
    %11 = vector.broadcast %c2_i32 : i32 to vector<8x128xi32>
    %12 = arith.cmpi slt, %10, %11 : vector<8x128xi32>
    %13 = arith.extui %12 : vector<8x128xi1> to vector<8x128xi32>
    %14 = arith.sitofp %13 : vector<8x128xi32> to vector<8x128xf32>
    %c-1_i32 = arith.constant -1 : i32
    %15 = vector.broadcast %c-1_i32 : i32 to vector<8x128xi32>
    %16 = arith.select %12, %4, %15 : vector<8x128xi1>, vector<8x128xi32>
    %c0_3 = arith.constant 0 : index
    %c0_4 = arith.constant 0 : index
    %c0_5 = arith.constant 0 : index
    %c0_6 = arith.constant 0 : index
    %17 = vector.load %arg3[%c0_3, %c0_4, %c0_5, %c0_6] : memref<1x4x8x128xf32, #tpu.memory_space<vmem>>, vector<1x1x8x128xf32>
    %18 = vector.shape_cast %17 : vector<1x1x8x128xf32> to vector<8x128xf32>
    %cst = arith.constant 0.000000e+00 : f32
    %19 = vector.broadcast %cst : f32 to vector<8x128xf32>
    %20 = arith.select %12, %18, %19 : vector<8x128xi1>, vector<8x128xf32>
    %c0_7 = arith.constant 0 : index
    %c1 = arith.constant 1 : index
    %c0_8 = arith.constant 0 : index
    %c0_9 = arith.constant 0 : index
    %21 = vector.load %arg3[%c0_7, %c1, %c0_8, %c0_9] : memref<1x4x8x128xf32, #tpu.memory_space<vmem>>, vector<1x1x8x128xf32>
    %22 = vector.shape_cast %21 : vector<1x1x8x128xf32> to vector<8x128xf32>
    %cst_10 = arith.constant 0.000000e+00 : f32
    %23 = vector.broadcast %cst_10 : f32 to vector<8x128xf32>
    %24 = arith.select %12, %22, %23 : vector<8x128xi1>, vector<8x128xf32>
    %c0_11 = arith.constant 0 : index
    %c2 = arith.constant 2 : index
    %c0_12 = arith.constant 0 : index
    %c0_13 = arith.constant 0 : index
    %25 = vector.load %arg3[%c0_11, %c2, %c0_12, %c0_13] : memref<1x4x8x128xf32, #tpu.memory_space<vmem>>, vector<1x1x8x128xf32>
    %26 = vector.shape_cast %25 : vector<1x1x8x128xf32> to vector<8x128xf32>
    %cst_14 = arith.constant 0.000000e+00 : f32
    %27 = vector.broadcast %cst_14 : f32 to vector<8x128xf32>
    %28 = arith.select %12, %26, %27 : vector<8x128xi1>, vector<8x128xf32>
    %c0_15 = arith.constant 0 : index
    %c3 = arith.constant 3 : index
    %c0_16 = arith.constant 0 : index
    %c0_17 = arith.constant 0 : index
    %29 = vector.load %arg3[%c0_15, %c3, %c0_16, %c0_17] : memref<1x4x8x128xf32, #tpu.memory_space<vmem>>, vector<1x1x8x128xf32>
    %30 = vector.shape_cast %29 : vector<1x1x8x128xf32> to vector<8x128xf32>
    %cst_18 = arith.constant 0.000000e+00 : f32
    %31 = vector.broadcast %cst_18 : f32 to vector<8x128xf32>
    %32 = arith.select %12, %30, %31 : vector<8x128xi1>, vector<8x128xf32>
    %33 = arith.maximumf %20, %24 : vector<8x128xf32>
    %34 = arith.maximumf %33, %28 : vector<8x128xf32>
    %35 = arith.maximumf %34, %32 : vector<8x128xf32>
    %36 = arith.subf %20, %35 : vector<8x128xf32>
    %37 = math.exp %36 : vector<8x128xf32>
    %38 = arith.subf %24, %35 : vector<8x128xf32>
    %39 = math.exp %38 : vector<8x128xf32>
    %40 = arith.subf %28, %35 : vector<8x128xf32>
    %41 = math.exp %40 : vector<8x128xf32>
    %42 = arith.subf %32, %35 : vector<8x128xf32>
    %43 = math.exp %42 : vector<8x128xf32>
    %44 = arith.addf %37, %39 : vector<8x128xf32>
    %45 = arith.addf %44, %41 : vector<8x128xf32>
    %46 = arith.addf %45, %43 : vector<8x128xf32>
    %47 = tpu.reciprocal %46 : vector<8x128xf32> -> vector<8x128xf32>
    %48 = math.log %46 : vector<8x128xf32>
    %49 = arith.addf %35, %48 : vector<8x128xf32>
    %50 = arith.mulf %47, %14 : vector<8x128xf32>
    %cst_19 = arith.constant 0.000000e+00 : f32
    %51 = vector.broadcast %cst_19 : f32 to vector<8x128xf32>
    %c0_i32_20 = arith.constant 0 : i32
    %52 = vector.broadcast %c0_i32_20 : i32 to vector<8x128xi32>
    %53 = arith.cmpi eq, %16, %52 : vector<8x128xi32>
    %54 = arith.extui %53 : vector<8x128xi1> to vector<8x128xi32>
    %55 = arith.sitofp %54 : vector<8x128xi32> to vector<8x128xf32>
    %56 = arith.mulf %37, %50 : vector<8x128xf32>
    %c0_21 = arith.constant 0 : index
    %c0_22 = arith.constant 0 : index
    %c0_23 = arith.constant 0 : index
    %c0_24 = arith.constant 0 : index
    %c0_25 = arith.constant 0 : index
    %57 = vector.load %arg5[%c0_21, %c0_22, %c0_23, %c0_24, %c0_25] : memref<1x1x13x8x128xf32, #tpu.memory_space<vmem>>, vector<1x1x1x8x128xf32>
    %58 = vector.shape_cast %57 : vector<1x1x1x8x128xf32> to vector<8x128xf32>
    %59 = vector.shape_cast %56 : vector<8x128xf32> to vector<1x8x128xf32>
    %cst_26 = arith.constant dense<0.000000e+00> : vector<8x128xf32>
    %60 = vector.multi_reduction <add>, %59, %cst_26 [0] : vector<1x8x128xf32> to vector<8x128xf32>
    %61 = arith.addf %58, %60 : vector<8x128xf32>
    %c0_27 = arith.constant 0 : index
    %c0_28 = arith.constant 0 : index
    %c0_29 = arith.constant 0 : index
    %c0_30 = arith.constant 0 : index
    %c0_31 = arith.constant 0 : index
    %62 = vector.load %arg5[%c0_27, %c0_28, %c0_29, %c0_30, %c0_31] : memref<1x1x13x8x128xf32, #tpu.memory_space<vmem>>, vector<1x1x1x8x128xf32>
    %63 = vector.shape_cast %62 : vector<1x1x1x8x128xf32> to vector<8x128xf32>
    %64 = vector.shape_cast %61 : vector<8x128xf32> to vector<1x1x1x8x128xf32>
    tpu.vector_store %arg5[%c0_27, %c0_28, %c0_29, %c0_30, %c0_31], %64 {strides = array<i32>} : memref<1x1x13x8x128xf32, #tpu.memory_space<vmem>>, vector<1x1x1x8x128xf32>,
    %c0_32 = arith.constant 0 : index
    %c0_33 = arith.constant 0 : index
    %c4 = arith.constant 4 : index
    %c0_34 = arith.constant 0 : index
    %c0_35 = arith.constant 0 : index
    %65 = vector.load %arg5[%c0_32, %c0_33, %c4, %c0_34, %c0_35] : memref<1x1x13x8x128xf32, #tpu.memory_space<vmem>>, vector<1x1x1x8x128xf32>
    %66 = vector.shape_cast %65 : vector<1x1x1x8x128xf32> to vector<8x128xf32>
    %67 = arith.mulf %56, %55 : vector<8x128xf32>
    %68 = vector.shape_cast %67 : vector<8x128xf32> to vector<1x8x128xf32>
    %cst_36 = arith.constant dense<0.000000e+00> : vector<8x128xf32>
    %69 = vector.multi_reduction <add>, %68, %cst_36 [0] : vector<1x8x128xf32> to vector<8x128xf32>
    %70 = arith.addf %66, %69 : vector<8x128xf32>
    %c0_37 = arith.constant 0 : index
    %c0_38 = arith.constant 0 : index
    %c4_39 = arith.constant 4 : index
    %c0_40 = arith.constant 0 : index
    %c0_41 = arith.constant 0 : index
    %71 = vector.load %arg5[%c0_37, %c0_38, %c4_39, %c0_40, %c0_41] : memref<1x1x13x8x128xf32, #tpu.memory_space<vmem>>, vector<1x1x1x8x128xf32>
    %72 = vector.shape_cast %71 : vector<1x1x1x8x128xf32> to vector<8x128xf32>
    %73 = vector.shape_cast %70 : vector<8x128xf32> to vector<1x1x1x8x128xf32>
    tpu.vector_store %arg5[%c0_37, %c0_38, %c4_39, %c0_40, %c0_41], %73 {strides = array<i32>} : memref<1x1x13x8x128xf32, #tpu.memory_space<vmem>>, vector<1x1x1x8x128xf32>,
    %c0_42 = arith.constant 0 : index
    %c0_43 = arith.constant 0 : index
    %c8 = arith.constant 8 : index
    %c0_44 = arith.constant 0 : index
    %c0_45 = arith.constant 0 : index
    %74 = vector.load %arg5[%c0_42, %c0_43, %c8, %c0_44, %c0_45] : memref<1x1x13x8x128xf32, #tpu.memory_space<vmem>>, vector<1x1x1x8x128xf32>
    %75 = vector.shape_cast %74 : vector<1x1x1x8x128xf32> to vector<8x128xf32>
    %76 = vector.shape_cast %55 : vector<8x128xf32> to vector<1x8x128xf32>
    %cst_46 = arith.constant dense<0.000000e+00> : vector<8x128xf32>
    %77 = vector.multi_reduction <add>, %76, %cst_46 [0] : vector<1x8x128xf32> to vector<8x128xf32>
    %78 = arith.addf %75, %77 : vector<8x128xf32>
    %c0_47 = arith.constant 0 : index
    %c0_48 = arith.constant 0 : index
    %c8_49 = arith.constant 8 : index
    %c0_50 = arith.constant 0 : index
    %c0_51 = arith.constant 0 : index
    %79 = vector.load %arg5[%c0_47, %c0_48, %c8_49, %c0_50, %c0_51] : memref<1x1x13x8x128xf32, #tpu.memory_space<vmem>>, vector<1x1x1x8x128xf32>
    %80 = vector.shape_cast %79 : vector<1x1x1x8x128xf32> to vector<8x128xf32>
    %81 = vector.shape_cast %78 : vector<8x128xf32> to vector<1x1x1x8x128xf32>
    tpu.vector_store %arg5[%c0_47, %c0_48, %c8_49, %c0_50, %c0_51], %81 {strides = array<i32>} : memref<1x1x13x8x128xf32, #tpu.memory_space<vmem>>, vector<1x1x1x8x128xf32>,
    %82 = arith.select %53, %20, %51 : vector<8x128xi1>, vector<8x128xf32>
    %c1_i32_52 = arith.constant 1 : i32
    %83 = vector.broadcast %c1_i32_52 : i32 to vector<8x128xi32>
    %84 = arith.cmpi eq, %16, %83 : vector<8x128xi32>
    %85 = arith.extui %84 : vector<8x128xi1> to vector<8x128xi32>
    %86 = arith.sitofp %85 : vector<8x128xi32> to vector<8x128xf32>
    %87 = arith.mulf %39, %50 : vector<8x128xf32>
    %c0_53 = arith.constant 0 : index
    %c0_54 = arith.constant 0 : index
    %c1_55 = arith.constant 1 : index
    %c0_56 = arith.constant 0 : index
    %c0_57 = arith.constant 0 : index
    %88 = vector.load %arg5[%c0_53, %c0_54, %c1_55, %c0_56, %c0_57] : memref<1x1x13x8x128xf32, #tpu.memory_space<vmem>>, vector<1x1x1x8x128xf32>
    %89 = vector.shape_cast %88 : vector<1x1x1x8x128xf32> to vector<8x128xf32>
    %90 = vector.shape_cast %87 : vector<8x128xf32> to vector<1x8x128xf32>
    %cst_58 = arith.constant dense<0.000000e+00> : vector<8x128xf32>
    %91 = vector.multi_reduction <add>, %90, %cst_58 [0] : vector<1x8x128xf32> to vector<8x128xf32>
    %92 = arith.addf %89, %91 : vector<8x128xf32>
    %c0_59 = arith.constant 0 : index
    %c0_60 = arith.constant 0 : index
    %c1_61 = arith.constant 1 : index
    %c0_62 = arith.constant 0 : index
    %c0_63 = arith.constant 0 : index
    %93 = vector.load %arg5[%c0_59, %c0_60, %c1_61, %c0_62, %c0_63] : memref<1x1x13x8x128xf32, #tpu.memory_space<vmem>>, vector<1x1x1x8x128xf32>
    %94 = vector.shape_cast %93 : vector<1x1x1x8x128xf32> to vector<8x128xf32>
    %95 = vector.shape_cast %92 : vector<8x128xf32> to vector<1x1x1x8x128xf32>
    tpu.vector_store %arg5[%c0_59, %c0_60, %c1_61, %c0_62, %c0_63], %95 {strides = array<i32>} : memref<1x1x13x8x128xf32, #tpu.memory_space<vmem>>, vector<1x1x1x8x128xf32>,
    %c0_64 = arith.constant 0 : index
    %c0_65 = arith.constant 0 : index
    %c5 = arith.constant 5 : index
    %c0_66 = arith.constant 0 : index
    %c0_67 = arith.constant 0 : index
    %96 = vector.load %arg5[%c0_64, %c0_65, %c5, %c0_66, %c0_67] : memref<1x1x13x8x128xf32, #tpu.memory_space<vmem>>, vector<1x1x1x8x128xf32>
    %97 = vector.shape_cast %96 : vector<1x1x1x8x128xf32> to vector<8x128xf32>
    %98 = arith.mulf %87, %86 : vector<8x128xf32>
    %99 = vector.shape_cast %98 : vector<8x128xf32> to vector<1x8x128xf32>
    %cst_68 = arith.constant dense<0.000000e+00> : vector<8x128xf32>
    %100 = vector.multi_reduction <add>, %99, %cst_68 [0] : vector<1x8x128xf32> to vector<8x128xf32>
    %101 = arith.addf %97, %100 : vector<8x128xf32>
    %c0_69 = arith.constant 0 : index
    %c0_70 = arith.constant 0 : index
    %c5_71 = arith.constant 5 : index
    %c0_72 = arith.constant 0 : index
    %c0_73 = arith.constant 0 : index
    %102 = vector.load %arg5[%c0_69, %c0_70, %c5_71, %c0_72, %c0_73] : memref<1x1x13x8x128xf32, #tpu.memory_space<vmem>>, vector<1x1x1x8x128xf32>
    %103 = vector.shape_cast %102 : vector<1x1x1x8x128xf32> to vector<8x128xf32>
    %104 = vector.shape_cast %101 : vector<8x128xf32> to vector<1x1x1x8x128xf32>
    tpu.vector_store %arg5[%c0_69, %c0_70, %c5_71, %c0_72, %c0_73], %104 {strides = array<i32>} : memref<1x1x13x8x128xf32, #tpu.memory_space<vmem>>, vector<1x1x1x8x128xf32>,
    %c0_74 = arith.constant 0 : index
    %c0_75 = arith.constant 0 : index
    %c9 = arith.constant 9 : index
    %c0_76 = arith.constant 0 : index
    %c0_77 = arith.constant 0 : index
    %105 = vector.load %arg5[%c0_74, %c0_75, %c9, %c0_76, %c0_77] : memref<1x1x13x8x128xf32, #tpu.memory_space<vmem>>, vector<1x1x1x8x128xf32>
    %106 = vector.shape_cast %105 : vector<1x1x1x8x128xf32> to vector<8x128xf32>
    %107 = vector.shape_cast %86 : vector<8x128xf32> to vector<1x8x128xf32>
    %cst_78 = arith.constant dense<0.000000e+00> : vector<8x128xf32>
    %108 = vector.multi_reduction <add>, %107, %cst_78 [0] : vector<1x8x128xf32> to vector<8x128xf32>
    %109 = arith.addf %106, %108 : vector<8x128xf32>
    %c0_79 = arith.constant 0 : index
    %c0_80 = arith.constant 0 : index
    %c9_81 = arith.constant 9 : index
    %c0_82 = arith.constant 0 : index
    %c0_83 = arith.constant 0 : index
    %110 = vector.load %arg5[%c0_79, %c0_80, %c9_81, %c0_82, %c0_83] : memref<1x1x13x8x128xf32, #tpu.memory_space<vmem>>, vector<1x1x1x8x128xf32>
    %111 = vector.shape_cast %110 : vector<1x1x1x8x128xf32> to vector<8x128xf32>
    %112 = vector.shape_cast %109 : vector<8x128xf32> to vector<1x1x1x8x128xf32>
    tpu.vector_store %arg5[%c0_79, %c0_80, %c9_81, %c0_82, %c0_83], %112 {strides = array<i32>} : memref<1x1x13x8x128xf32, #tpu.memory_space<vmem>>, vector<1x1x1x8x128xf32>,
    %113 = arith.select %84, %24, %82 : vector<8x128xi1>, vector<8x128xf32>
    %c2_i32_84 = arith.constant 2 : i32
    %114 = vector.broadcast %c2_i32_84 : i32 to vector<8x128xi32>
    %115 = arith.cmpi eq, %16, %114 : vector<8x128xi32>
    %116 = arith.extui %115 : vector<8x128xi1> to vector<8x128xi32>
    %117 = arith.sitofp %116 : vector<8x128xi32> to vector<8x128xf32>
    %118 = arith.mulf %41, %50 : vector<8x128xf32>
    %c0_85 = arith.constant 0 : index
    %c0_86 = arith.constant 0 : index
    %c2_87 = arith.constant 2 : index
    %c0_88 = arith.constant 0 : index
    %c0_89 = arith.constant 0 : index
    %119 = vector.load %arg5[%c0_85, %c0_86, %c2_87, %c0_88, %c0_89] : memref<1x1x13x8x128xf32, #tpu.memory_space<vmem>>, vector<1x1x1x8x128xf32>
    %120 = vector.shape_cast %119 : vector<1x1x1x8x128xf32> to vector<8x128xf32>
    %121 = vector.shape_cast %118 : vector<8x128xf32> to vector<1x8x128xf32>
    %cst_90 = arith.constant dense<0.000000e+00> : vector<8x128xf32>
    %122 = vector.multi_reduction <add>, %121, %cst_90 [0] : vector<1x8x128xf32> to vector<8x128xf32>
    %123 = arith.addf %120, %122 : vector<8x128xf32>
    %c0_91 = arith.constant 0 : index
    %c0_92 = arith.constant 0 : index
    %c2_93 = arith.constant 2 : index
    %c0_94 = arith.constant 0 : index
    %c0_95 = arith.constant 0 : index
    %124 = vector.load %arg5[%c0_91, %c0_92, %c2_93, %c0_94, %c0_95] : memref<1x1x13x8x128xf32, #tpu.memory_space<vmem>>, vector<1x1x1x8x128xf32>
    %125 = vector.shape_cast %124 : vector<1x1x1x8x128xf32> to vector<8x128xf32>
    %126 = vector.shape_cast %123 : vector<8x128xf32> to vector<1x1x1x8x128xf32>
    tpu.vector_store %arg5[%c0_91, %c0_92, %c2_93, %c0_94, %c0_95], %126 {strides = array<i32>} : memref<1x1x13x8x128xf32, #tpu.memory_space<vmem>>, vector<1x1x1x8x128xf32>,
    %c0_96 = arith.constant 0 : index
    %c0_97 = arith.constant 0 : index
    %c6 = arith.constant 6 : index
    %c0_98 = arith.constant 0 : index
    %c0_99 = arith.constant 0 : index
    %127 = vector.load %arg5[%c0_96, %c0_97, %c6, %c0_98, %c0_99] : memref<1x1x13x8x128xf32, #tpu.memory_space<vmem>>, vector<1x1x1x8x128xf32>
    %128 = vector.shape_cast %127 : vector<1x1x1x8x128xf32> to vector<8x128xf32>
    %129 = arith.mulf %118, %117 : vector<8x128xf32>
    %130 = vector.shape_cast %129 : vector<8x128xf32> to vector<1x8x128xf32>
    %cst_100 = arith.constant dense<0.000000e+00> : vector<8x128xf32>
    %131 = vector.multi_reduction <add>, %130, %cst_100 [0] : vector<1x8x128xf32> to vector<8x128xf32>
    %132 = arith.addf %128, %131 : vector<8x128xf32>
    %c0_101 = arith.constant 0 : index
    %c0_102 = arith.constant 0 : index
    %c6_103 = arith.constant 6 : index
    %c0_104 = arith.constant 0 : index
    %c0_105 = arith.constant 0 : index
    %133 = vector.load %arg5[%c0_101, %c0_102, %c6_103, %c0_104, %c0_105] : memref<1x1x13x8x128xf32, #tpu.memory_space<vmem>>, vector<1x1x1x8x128xf32>
    %134 = vector.shape_cast %133 : vector<1x1x1x8x128xf32> to vector<8x128xf32>
    %135 = vector.shape_cast %132 : vector<8x128xf32> to vector<1x1x1x8x128xf32>
    tpu.vector_store %arg5[%c0_101, %c0_102, %c6_103, %c0_104, %c0_105], %135 {strides = array<i32>} : memref<1x1x13x8x128xf32, #tpu.memory_space<vmem>>, vector<1x1x1x8x128xf32>,
    %c0_106 = arith.constant 0 : index
    %c0_107 = arith.constant 0 : index
    %c10 = arith.constant 10 : index
    %c0_108 = arith.constant 0 : index
    %c0_109 = arith.constant 0 : index
    %136 = vector.load %arg5[%c0_106, %c0_107, %c10, %c0_108, %c0_109] : memref<1x1x13x8x128xf32, #tpu.memory_space<vmem>>, vector<1x1x1x8x128xf32>
    %137 = vector.shape_cast %136 : vector<1x1x1x8x128xf32> to vector<8x128xf32>
    %138 = vector.shape_cast %117 : vector<8x128xf32> to vector<1x8x128xf32>
    %cst_110 = arith.constant dense<0.000000e+00> : vector<8x128xf32>
    %139 = vector.multi_reduction <add>, %138, %cst_110 [0] : vector<1x8x128xf32> to vector<8x128xf32>
    %140 = arith.addf %137, %139 : vector<8x128xf32>
    %c0_111 = arith.constant 0 : index
    %c0_112 = arith.constant 0 : index
    %c10_113 = arith.constant 10 : index
    %c0_114 = arith.constant 0 : index
    %c0_115 = arith.constant 0 : index
    %141 = vector.load %arg5[%c0_111, %c0_112, %c10_113, %c0_114, %c0_115] : memref<1x1x13x8x128xf32, #tpu.memory_space<vmem>>, vector<1x1x1x8x128xf32>
    %142 = vector.shape_cast %141 : vector<1x1x1x8x128xf32> to vector<8x128xf32>
    %143 = vector.shape_cast %140 : vector<8x128xf32> to vector<1x1x1x8x128xf32>
    tpu.vector_store %arg5[%c0_111, %c0_112, %c10_113, %c0_114, %c0_115], %143 {strides = array<i32>} : memref<1x1x13x8x128xf32, #tpu.memory_space<vmem>>, vector<1x1x1x8x128xf32>,
    %144 = arith.select %115, %28, %113 : vector<8x128xi1>, vector<8x128xf32>
    %c3_i32 = arith.constant 3 : i32
    %145 = vector.broadcast %c3_i32 : i32 to vector<8x128xi32>
    %146 = arith.cmpi eq, %16, %145 : vector<8x128xi32>
    %147 = arith.extui %146 : vector<8x128xi1> to vector<8x128xi32>
    %148 = arith.sitofp %147 : vector<8x128xi32> to vector<8x128xf32>
    %149 = arith.mulf %43, %50 : vector<8x128xf32>
    %c0_116 = arith.constant 0 : index
    %c0_117 = arith.constant 0 : index
    %c3_118 = arith.constant 3 : index
    %c0_119 = arith.constant 0 : index
    %c0_120 = arith.constant 0 : index
    %150 = vector.load %arg5[%c0_116, %c0_117, %c3_118, %c0_119, %c0_120] : memref<1x1x13x8x128xf32, #tpu.memory_space<vmem>>, vector<1x1x1x8x128xf32>
    %151 = vector.shape_cast %150 : vector<1x1x1x8x128xf32> to vector<8x128xf32>
    %152 = vector.shape_cast %149 : vector<8x128xf32> to vector<1x8x128xf32>
    %cst_121 = arith.constant dense<0.000000e+00> : vector<8x128xf32>
    %153 = vector.multi_reduction <add>, %152, %cst_121 [0] : vector<1x8x128xf32> to vector<8x128xf32>
    %154 = arith.addf %151, %153 : vector<8x128xf32>
    %c0_122 = arith.constant 0 : index
    %c0_123 = arith.constant 0 : index
    %c3_124 = arith.constant 3 : index
    %c0_125 = arith.constant 0 : index
    %c0_126 = arith.constant 0 : index
    %155 = vector.load %arg5[%c0_122, %c0_123, %c3_124, %c0_125, %c0_126] : memref<1x1x13x8x128xf32, #tpu.memory_space<vmem>>, vector<1x1x1x8x128xf32>
    %156 = vector.shape_cast %155 : vector<1x1x1x8x128xf32> to vector<8x128xf32>
    %157 = vector.shape_cast %154 : vector<8x128xf32> to vector<1x1x1x8x128xf32>
    tpu.vector_store %arg5[%c0_122, %c0_123, %c3_124, %c0_125, %c0_126], %157 {strides = array<i32>} : memref<1x1x13x8x128xf32, #tpu.memory_space<vmem>>, vector<1x1x1x8x128xf32>,
    %c0_127 = arith.constant 0 : index
    %c0_128 = arith.constant 0 : index
    %c7 = arith.constant 7 : index
    %c0_129 = arith.constant 0 : index
    %c0_130 = arith.constant 0 : index
    %158 = vector.load %arg5[%c0_127, %c0_128, %c7, %c0_129, %c0_130] : memref<1x1x13x8x128xf32, #tpu.memory_space<vmem>>, vector<1x1x1x8x128xf32>
    %159 = vector.shape_cast %158 : vector<1x1x1x8x128xf32> to vector<8x128xf32>
    %160 = arith.mulf %149, %148 : vector<8x128xf32>
    %161 = vector.shape_cast %160 : vector<8x128xf32> to vector<1x8x128xf32>
    %cst_131 = arith.constant dense<0.000000e+00> : vector<8x128xf32>
    %162 = vector.multi_reduction <add>, %161, %cst_131 [0] : vector<1x8x128xf32> to vector<8x128xf32>
    %163 = arith.addf %159, %162 : vector<8x128xf32>
    %c0_132 = arith.constant 0 : index
    %c0_133 = arith.constant 0 : index
    %c7_134 = arith.constant 7 : index
    %c0_135 = arith.constant 0 : index
    %c0_136 = arith.constant 0 : index
    %164 = vector.load %arg5[%c0_132, %c0_133, %c7_134, %c0_135, %c0_136] : memref<1x1x13x8x128xf32, #tpu.memory_space<vmem>>, vector<1x1x1x8x128xf32>
    %165 = vector.shape_cast %164 : vector<1x1x1x8x128xf32> to vector<8x128xf32>
    %166 = vector.shape_cast %163 : vector<8x128xf32> to vector<1x1x1x8x128xf32>
    tpu.vector_store %arg5[%c0_132, %c0_133, %c7_134, %c0_135, %c0_136], %166 {strides = array<i32>} : memref<1x1x13x8x128xf32, #tpu.memory_space<vmem>>, vector<1x1x1x8x128xf32>,
    %c0_137 = arith.constant 0 : index
    %c0_138 = arith.constant 0 : index
    %c11 = arith.constant 11 : index
    %c0_139 = arith.constant 0 : index
    %c0_140 = arith.constant 0 : index
    %167 = vector.load %arg5[%c0_137, %c0_138, %c11, %c0_139, %c0_140] : memref<1x1x13x8x128xf32, #tpu.memory_space<vmem>>, vector<1x1x1x8x128xf32>
    %168 = vector.shape_cast %167 : vector<1x1x1x8x128xf32> to vector<8x128xf32>
    %169 = vector.shape_cast %148 : vector<8x128xf32> to vector<1x8x128xf32>
    %cst_141 = arith.constant dense<0.000000e+00> : vector<8x128xf32>
    %170 = vector.multi_reduction <add>, %169, %cst_141 [0] : vector<1x8x128xf32> to vector<8x128xf32>
    %171 = arith.addf %168, %170 : vector<8x128xf32>
    %c0_142 = arith.constant 0 : index
    %c0_143 = arith.constant 0 : index
    %c11_144 = arith.constant 11 : index
    %c0_145 = arith.constant 0 : index
    %c0_146 = arith.constant 0 : index
    %172 = vector.load %arg5[%c0_142, %c0_143, %c11_144, %c0_145, %c0_146] : memref<1x1x13x8x128xf32, #tpu.memory_space<vmem>>, vector<1x1x1x8x128xf32>
    %173 = vector.shape_cast %172 : vector<1x1x1x8x128xf32> to vector<8x128xf32>
    %174 = vector.shape_cast %171 : vector<8x128xf32> to vector<1x1x1x8x128xf32>
    tpu.vector_store %arg5[%c0_142, %c0_143, %c11_144, %c0_145, %c0_146], %174 {strides = array<i32>} : memref<1x1x13x8x128xf32, #tpu.memory_space<vmem>>, vector<1x1x1x8x128xf32>,
    %175 = arith.select %146, %32, %144 : vector<8x128xi1>, vector<8x128xf32>
    %176 = arith.subf %49, %175 : vector<8x128xf32>
    %177 = arith.mulf %176, %14 : vector<8x128xf32>
    %c0_147 = arith.constant 0 : index
    %c0_148 = arith.constant 0 : index
    %c12 = arith.constant 12 : index
    %c0_149 = arith.constant 0 : index
    %c0_150 = arith.constant 0 : index
    %178 = vector.load %arg5[%c0_147, %c0_148, %c12, %c0_149, %c0_150] : memref<1x1x13x8x128xf32, #tpu.memory_space<vmem>>, vector<1x1x1x8x128xf32>
    %179 = vector.shape_cast %178 : vector<1x1x1x8x128xf32> to vector<8x128xf32>
    %180 = vector.shape_cast %177 : vector<8x128xf32> to vector<1x8x128xf32>
    %cst_151 = arith.constant dense<0.000000e+00> : vector<8x128xf32>
    %181 = vector.multi_reduction <add>, %180, %cst_151 [0] : vector<1x8x128xf32> to vector<8x128xf32>
    %182 = arith.addf %179, %181 : vector<8x128xf32>
    %c0_152 = arith.constant 0 : index
    %c0_153 = arith.constant 0 : index
    %c12_154 = arith.constant 12 : index
    %c0_155 = arith.constant 0 : index
    %c0_156 = arith.constant 0 : index
    %183 = vector.load %arg5[%c0_152, %c0_153, %c12_154, %c0_155, %c0_156] : memref<1x1x13x8x128xf32, #tpu.memory_space<vmem>>, vector<1x1x1x8x128xf32>
    %184 = vector.shape_cast %183 : vector<1x1x1x8x128xf32> to vector<8x128xf32>
    %185 = vector.shape_cast %182 : vector<8x128xf32> to vector<1x1x1x8x128xf32>
    tpu.vector_store %arg5[%c0_152, %c0_153, %c12_154, %c0_155, %c0_156], %185 {strides = array<i32>} : memref<1x1x13x8x128xf32, #tpu.memory_space<vmem>>, vector<1x1x1x8x128xf32>,
    return
  }
  func.func @transform_0(%arg0: i32, %arg1: i32, %arg2: i32) -> (i32, i32, i32, i32) {
    %c1_i32 = arith.constant 1 : i32
    %0 = arith.muli %arg1, %c1_i32 : i32
    %1 = arith.addi %0, %arg2 : i32
    %c0_i32 = arith.constant 0 : i32
    %2 = arith.minsi %1, %c0_i32 : i32
    %c0_i32_0 = arith.constant 0 : i32
    %c0_i32_1 = arith.constant 0 : i32
    %c0_i32_2 = arith.constant 0 : i32
    return %arg0, %c0_i32_0, %2, %c0_i32_1 : i32, i32, i32, i32
  }
  func.func @transform_1(%arg0: i32, %arg1: i32, %arg2: i32) -> (i32, i32, i32) {
    %c1_i32 = arith.constant 1 : i32
    %0 = arith.muli %arg1, %c1_i32 : i32
    %1 = arith.addi %0, %arg2 : i32
    %c0_i32 = arith.constant 0 : i32
    %2 = arith.minsi %1, %c0_i32 : i32
    %c0_i32_0 = arith.constant 0 : i32
    %c0_i32_1 = arith.constant 0 : i32
    return %arg0, %2, %c0_i32_0 : i32, i32, i32
  }
  func.func @transform_2(%arg0: i32, %arg1: i32, %arg2: i32) -> (i32, i32, i32, i32, i32) {
    %c0_i32 = arith.constant 0 : i32
    %c0_i32_0 = arith.constant 0 : i32
    %c0_i32_1 = arith.constant 0 : i32
    %c0_i32_2 = arith.constant 0 : i32
    return %arg0, %arg1, %c0_i32, %c0_i32_0, %c0_i32_1 : i32, i32, i32, i32, i32
  }
}

</mosaic_0001>

<bundles_post_ra>
// kernel: combined_loss.1
= control target key start
LH: loop header
LB: loop body
LE: loop exit
PB: predicated region body
PF: predicated region fallthrough
CT: control target
= control target key end

     0   :  { %s635_s9 = smov 0   ;;  %s637_s10 = smov 0   ;;  %s700_s0 = inlined_call_operand.vmem [shape: f32[2,4,8,128], index: 0, kind: input, shape index: {}]   ;;  %s701_s1 = inlined_call_operand.vmem [shape: s32[2,8,128], index: 1, kind: input, shape index: {}]   ;;  %s702_s2 = inlined_call_operand.vmem [shape: f32[2,1,13,8,128], index: 2, kind: output, shape index: {}]  }
   0x1   :  { %s639_s11 = smov 0  }
   0x2 LB: > { %s31_s12 = sadd.s32 1, %s613_s10  ;;  %p517_p0 = scmp.ge.s32.totalorder %s617_s11, 1  ;;  %s617_s11 = sphi %s639_s11, %s12_s11   ;;  %s613_s10 = sphi %s637_s10, %s704_s10   ;;  %s609_s9 = sphi %s635_s9, %s703_s9  }
   0x3   : > { %p33_p1 = scmp.ge.s32.totalorder %s31_s12, 2  ;;  %p176_p2 = scmp.lt.s32.totalorder %s617_s11, 3 }
   0x5   : > { %s706_s12 = smov (%p33_p1, %s31_s12), 0  ;;  %p177_p3 = pnand %p517_p0, %p176_p2 }
   0x6   : > { %p221_p4 = scmp.lt.s32.totalorder (!%p177_p3), %s609_s9, 1 }
   0x7   : > { %180 = sbr.rel (%p177_p3) target bundleno = 73 (0x49), region = 28 }
   0xc   : > { %v273_v0 = vlaneseq  ;;  %s708_s9 = smov (!%p221_p4, %s609_s9), 1  ;;  %v619_v14 = vmov 0.0  }
   0xd   : > { %s556_s13 = sshll.u32 %s708_s9, 5  ;;  %s520_s17 = sshll.u32 %s708_s9, 3 }
   0xe   : > { %v274_v1 = vshrl.u32 %v273_v0, 7  ;;  %s228_s16 = scalar_lea.vmem %s700_s0, %s556_s13  ;;  %s557_s18 = smul.u32 104, %s708_s9 }
   0xf   : > { %v282_v2 = vld [vmem:[%s228_s16] sm:$0xff]  ;;  %v523_v3 = vld [vmem:[%s228_s16 + $0x8] sm:$0xff]  ;;  %v524_v4 = vld [vmem:[%s228_s16 + $0x10] sm:$0xff]  ;;  %s241_s21 = scalar_lea.vmem %s701_s1, %s520_s17 }
  0x10   : > { %vm278_vm0 = vcmp.lt.s32.totalorder %v274_v1, 2  ;;  %v525_v8 = vld [vmem:[%s228_s16 + $0x18] sm:$0xff]  ;;  %v271_v9 = vld [vmem:[%s241_s21] sm:$0xff]  ;;  %s667_s24 = scalar_lea.vmem %s702_s2, %s557_s18 }
  0x11   : > { %v283_v5 = vsel %vm278_vm0, %v282_v2, 0.0  ;;  %v286_v6 = vsel %vm278_vm0, %v523_v3, 0.0  ;;  %v289_v7 = vsel %vm278_vm0, %v524_v4, 0.0  ;;  %v281_v11 = vsel %vm278_vm0, %v271_v9, 4294967295 }
  0x12   : > { %v293_v10 = vmax.f32 %v283_v5, %v286_v6  ;;  %v292_v12 = vsel %vm278_vm0, %v525_v8, 0.0  ;;  %vm316_vm1 = vcmp.eq.s32.totalorder %v281_v11, 0  ;;  %vm336_vm2 = vcmp.eq.s32.totalorder %v281_v11, 1 }
  0x13   : > { %v526_v15 = vsel %vm316_vm1, 1.0, %v619_v14  ;;  %v531_v16 = vsel %vm336_vm2, 1.0, %v619_v14  ;;  %vm357_vm3 = vcmp.eq.s32.totalorder %v281_v11, 2  ;;  %vm378_vm4 = vcmp.eq.s32.totalorder %v281_v11, 3 }
  0x14   : > { %v294_v13 = vmax.f32 %v293_v10, %v289_v7  ;;  %v538_v17 = vsel %vm357_vm3, 1.0, %v619_v14  ;;  %v545_v19 = vsel %vm378_vm4, 1.0, %v619_v14  ;;  %530 = vst [vmem:[%s667_s24 + $0x40] sm:$0xff] %v526_v15  ;;  %537 = vst [vmem:[%s667_s24 + $0x48] sm:$0xff] %v531_v16  ;;  %v335_v35 = vsel %vm316_vm1, %v283_v5, 0.0 }
  0x15   : > { %544 = vst [vmem:[%s667_s24 + $0x50] sm:$0xff] %v538_v17  ;;  %551 = vst [vmem:[%s667_s24 + $0x58] sm:$0xff] %v545_v19  ;;  %v522_v36 = vsel %vm278_vm0, 1.0, %v619_v14  ;;  %v356_v37 = vsel %vm336_vm2, %v286_v6, %v335_v35 }
  0x16   : > { %v295_v18 = vmax.f32 %v294_v13, %v292_v12  ;;  %v377_v41 = vsel %vm357_vm3, %v289_v7, %v356_v37 }
  0x17   : > { %v398_v48 = vsel %vm378_vm4, %v292_v12, %v377_v41 }
  0x18   : > { %v296_v20 = vsub.f32 %v283_v5, %v295_v18  ;;  %v299_v21 = vsub.f32 %v286_v6, %v295_v18  ;;  %v302_v22 = vsub.f32 %v289_v7, %v295_v18  ;;  %v305_v23 = vsub.f32 %v292_v12, %v295_v18 }
  0x1a   : > { %v297_v24 = vmul.f32 1.442695, %v296_v20  ;;  %v300_v25 = vmul.f32 1.442695, %v299_v21  ;;  %v303_v26 = vmul.f32 1.442695, %v302_v22 }
  0x1b   : > { %v306_v27 = vmul.f32 1.442695, %v305_v23 }
  0x1c   : > { %583 = vpow2.f32 %v297_v24 }
  0x1d   : > { %585 = vpow2.f32 %v300_v25 }
  0x1e   : > { %587 = vpow2.f32 %v303_v26 }
  0x1f   : > { %589 = vpow2.f32 %v306_v27 }
  0x29   : > { %v584_v28 = vpop.eup %583 }
  0x2a   : > { %v586_v29 = vpop.eup %585 }
  0x2b   : > { %v588_v30 = vpop.eup %587  ;;  %v308_v31 = vadd.f32 %v586_v29, %v584_v28 }
  0x2c   : > { %v590_v32 = vpop.eup %589 }
  0x2d   : > { %v309_v33 = vadd.f32 %v588_v30, %v308_v31 }
  0x2f   : > { %v310_v34 = vadd.f32 %v590_v32, %v309_v33 }
  0x31   : > { %591 = vrcp.f32 %v310_v34 }
  0x32   : > { %593 = vlog2.f32 %v310_v34 }
  0x3e   : > { %v592_v38 = vpop.eup %591 }
  0x3f   : > { %v594_v39 = vpop.eup %593  ;;  %v315_v40 = vmul.f32 %v592_v38, %v522_v36 }
  0x40   : > { %v313_v42 = vmul.f32 0.6931472, %v594_v39 }
  0x41   : > { %v319_v43 = vmul.f32 %v584_v28, %v315_v40  ;;  %v339_v44 = vmul.f32 %v586_v29, %v315_v40  ;;  %v360_v45 = vmul.f32 %v588_v30, %v315_v40  ;;  %v381_v46 = vmul.f32 %v590_v32, %v315_v40 }
  0x42   : > { %v314_v47 = vadd.f32 %v313_v42, %v295_v18 }
  0x43   : > { %v326_v49 = vmul.f32 %v526_v15, %v319_v43  ;;  %v347_v50 = vmul.f32 %v531_v16, %v339_v44  ;;  %v368_v51 = vmul.f32 %v538_v17, %v360_v45  ;;  %v389_v52 = vmul.f32 %v545_v19, %v381_v46  ;;  %323 = vst [vmem:[%s667_s24] sm:$0xff] %v319_v43 }
  0x44   : > { %533 = vst [vmem:[%s667_s24 + $0x8] sm:$0xff] %v339_v44  ;;  %v399_v53 = vsub.f32 %v314_v47, %v398_v48  ;;  %540 = vst [vmem:[%s667_s24 + $0x10] sm:$0xff] %v360_v45 }
  0x45   : > { %547 = vst [vmem:[%s667_s24 + $0x18] sm:$0xff] %v381_v46  ;;  %528 = vst [vmem:[%s667_s24 + $0x20] sm:$0xff] %v326_v49 }
  0x46   : > { %535 = vst [vmem:[%s667_s24 + $0x28] sm:$0xff] %v347_v50  ;;  %v400_v54 = vmul.f32 %v522_v36, %v399_v53  ;;  %542 = vst [vmem:[%s667_s24 + $0x30] sm:$0xff] %v368_v51 }
  0x47   : > { %549 = vst [vmem:[%s667_s24 + $0x38] sm:$0xff] %v389_v52 }
  0x48   : > { %553 = vst [vmem:[%s667_s24 + $0x60] sm:$0xff] %v400_v54 }
  0x49 PF: > { %s12_s11 = sadd.s32 1, %s617_s11   ;;  %s703_s9 = smov %s613_s10 }
  0x4a   : > { %p9_p5 = scmp.ge.s32.totalorder %s12_s11, 4   ;;  %s704_s10 = smov %s706_s12 }
  0x4c   :  { %11 = sbr.rel (!%p9_p5) target bundleno = 2 (0x2), region = 80 }

</bundles_post_ra>
